<compile_context>
chip_gen: v7x
topology: tpu7x:2x2x1
jax: 0.10.0
libtpu: 0.0.40
codegen_flags: <defaults>
</compile_context>

<pallas_src>
import functools

import jax
import jax.numpy as jnp
from jax import lax
from jax.experimental import pallas as pl
from jax.experimental.pallas import tpu as pltpu


def _conv_kernel(x_ref, w_ref, b_ref, o_ref, *, W, KH, KW):
    """One batch element: full-width sliding conv over the flattened image.

    x_ref: (1, Cin, H*W)        VMEM, image with spatial flattened on lanes
    w_ref: (KH*KW, Cout, Cin)   VMEM, tap-major data-channel weights
    b_ref: (Cout, 1)            VMEM, bias with the time channel folded in
    o_ref: (1, Cout, H*W)       VMEM, full-width output (cropped in wrapper)
    """
    HW = x_ref.shape[-1]
    Cout = o_ref.shape[1]

    x = x_ref[0]                                    # (Cin, HW)
    acc = jnp.zeros((Cout, HW), jnp.float32)
    # Static 3x3 tap loop. Each tap: circular lane shift of the flattened
    # image + one (Cout, Cin) x (Cin, HW) matmul on the MXU, f32 accumulate.
    for kh in range(KH):
        for kw in range(KW):
            s = kh * W + kw
            xs = x if s == 0 else pltpu.roll(x, shift=HW - s, axis=1)
            acc = acc + jnp.dot(w_ref[kh * KW + kw], xs,
                                preferred_element_type=jnp.float32)
    acc = acc + b_ref[...].astype(jnp.float32)      # (Cout, 1) lane-broadcast
    o_ref[0] = acc.astype(o_ref.dtype)


def concat_conv2d(t, x, w_oihw, b):
    """Forward of ConcatConv2d.

    t: scalar (float), x: (N, Cin, H, W) NCHW, w_oihw: (Cout, Cin+1, KH, KW),
    b: (Cout,).  Returns (N, Cout, H-KH+1, W-KW+1) NCHW.
    """
    N, Cin, H, W = x.shape
    Cout, Cin1, KH, KW = w_oihw.shape
    assert Cin1 == Cin + 1
    OH, OW = H - KH + 1, W - KW + 1
    HW = H * W

    # Fold the constant time channel into the bias (exact only because
    # padding=VALID with a spatially-constant t channel).
    b_eff = (b.astype(jnp.float32)
             + jnp.asarray(t, jnp.float32)
             * jnp.sum(w_oihw[:, 0, :, :].astype(jnp.float32), axis=(1, 2)))
    b_col = b_eff.reshape(Cout, 1)                            # (Cout, 1) f32

    # Data-channel weights, tap-major: (KH, KW, Cout, Cin) -> (KH*KW, Cout, Cin).
    w_taps = jnp.transpose(w_oihw[:, 1:, :, :], (2, 3, 0, 1)).reshape(
        KH * KW, Cout, Cin)

    # Flatten spatial onto the lane axis (free: NCHW is row-major contiguous).
    x_flat = x.reshape(N, Cin, HW)

    kernel = functools.partial(_conv_kernel, W=W, KH=KH, KW=KW)

    out_flat = pl.pallas_call(
        kernel,
        out_shape=jax.ShapeDtypeStruct((N, Cout, HW), x.dtype),
        grid=(N,),
        in_specs=[
            pl.BlockSpec((1, Cin, HW), lambda n: (n, 0, 0)),
            pl.BlockSpec((KH * KW, Cout, Cin), lambda n: (0, 0, 0)),
            pl.BlockSpec((Cout, 1), lambda n: (0, 0)),
        ],
        out_specs=pl.BlockSpec((1, Cout, HW), lambda n: (n, 0, 0)),
        compiler_params=pltpu.CompilerParams(
            dimension_semantics=("parallel",)),   # batch splits across v7x TCs
    )(x_flat, w_taps, b_col)

    # Crop the full-width sliding output down to the VALID conv result
    # (reshape is free; the slice only copies the tiny final output).
    return out_flat.reshape(N, Cout, H, W)[:, :, :OH, :OW]


if __name__ == "__main__":
    # Deterministic parameters / inputs (synthetic; no checkpoint load).
    dim_in, dim_out, ksize = 4, 8, 3
    N, H, W = 2, 16, 16

    key = jax.random.PRNGKey(0)
    k_x, k_w, k_b = jax.random.split(key, 3)
    x = jax.random.normal(k_x, (N, dim_in, H, W), jnp.float32)
    t = jnp.float32(0.5)
    w = jax.random.normal(k_w, (dim_out, dim_in + 1, ksize, ksize),
                          jnp.float32) * 0.1
    b = jax.random.normal(k_b, (dim_out,), jnp.float32) * 0.1

    out = jax.block_until_ready(concat_conv2d(t, x, w, b))
    assert out.shape == (N, dim_out, H - ksize + 1, W - ksize + 1)

    # Reference check against XLA conv (same semantics as torch Conv2d, padding=0).
    tt = jnp.ones((N, 1, H, W), x.dtype) * t
    ttx = jnp.concatenate([tt, x], axis=1)
    ref = lax.conv_general_dilated(
        ttx, w, window_strides=(1, 1), padding="VALID",
        dimension_numbers=("NCHW", "OIHW", "NCHW")) + b[None, :, None, None]
    assert jnp.allclose(out, ref, rtol=1e-5, atol=1e-4), \
        float(jnp.max(jnp.abs(out - ref)))

    print("KERNEL_OK")
</pallas_src>

<mosaic_0001>
module attributes {stable_mosaic.version = 11 : i64} {
  func.func @_conv_kernel(%arg0: i32, %arg1: memref<1x4x256xf32, #tpu.memory_space<vmem>>, %arg2: memref<9x8x4xf32, #tpu.memory_space<vmem>>, %arg3: memref<8x1xf32, #tpu.memory_space<vmem>>, %arg4: memref<1x8x256xf32, #tpu.memory_space<vmem>>) attributes {dimension_semantics = [#tpu.dimension_semantics<parallel>], iteration_bounds = array<i64: 2>, scalar_prefetch = 0 : i64, scratch_operands = 0 : i64, tpu.core_type = #tpu.core_type<tc>, window_params = [{transform_indices = @transform_0, window_bounds = array<i64: 1, 4, 256>}, {pipeline_mode = #tpu.pipeline_mode<synchronous>, transform_indices = @transform_1, window_bounds = array<i64: 9, 8, 4>}, {pipeline_mode = #tpu.pipeline_mode<synchronous>, transform_indices = @transform_2, window_bounds = array<i64: 8, 1>}, {transform_indices = @transform_3, window_bounds = array<i64: 1, 8, 256>}]} {
    %c0 = arith.constant 0 : index
    %c0_0 = arith.constant 0 : index
    %c0_1 = arith.constant 0 : index
    %0 = vector.load %arg1[%c0, %c0_0, %c0_1] : memref<1x4x256xf32, #tpu.memory_space<vmem>>, vector<1x4x256xf32>
    %1 = vector.shape_cast %0 : vector<1x4x256xf32> to vector<4x256xf32>
    %cst = arith.constant 0.000000e+00 : f32
    %2 = vector.broadcast %cst : f32 to vector<8x256xf32>
    %c0_2 = arith.constant 0 : index
    %c0_3 = arith.constant 0 : index
    %c0_4 = arith.constant 0 : index
    %3 = vector.load %arg2[%c0_2, %c0_3, %c0_4] : memref<9x8x4xf32, #tpu.memory_space<vmem>>, vector<1x8x4xf32>
    %4 = vector.shape_cast %3 : vector<1x8x4xf32> to vector<8x4xf32>
    %cst_5 = arith.constant dense<0.000000e+00> : vector<8x256xf32>
    %5 = tpu.matmul %4, %1, %cst_5 {dimension_numbers = #tpu.dot_dimension_numbers<[1], [0], [0], [1], [0, 0, 1, 1], [], []>} : vector<8x4xf32>, vector<4x256xf32>, vector<8x256xf32> -> vector<8x256xf32>
    %6 = arith.addf %2, %5 : vector<8x256xf32>
    %c255_i32 = arith.constant 255 : i32
    %7 = tpu.dynamic_rotate %1 by %c255_i32 dim 1 : vector<4x256xf32>, i32 -> vector<4x256xf32>
    %c1 = arith.constant 1 : index
    %c0_6 = arith.constant 0 : index
    %c0_7 = arith.constant 0 : index
    %8 = vector.load %arg2[%c1, %c0_6, %c0_7] : memref<9x8x4xf32, #tpu.memory_space<vmem>>, vector<1x8x4xf32>
    %9 = vector.shape_cast %8 : vector<1x8x4xf32> to vector<8x4xf32>
    %cst_8 = arith.constant dense<0.000000e+00> : vector<8x256xf32>
    %10 = tpu.matmul %9, %7, %cst_8 {dimension_numbers = #tpu.dot_dimension_numbers<[1], [0], [0], [1], [0, 0, 1, 1], [], []>} : vector<8x4xf32>, vector<4x256xf32>, vector<8x256xf32> -> vector<8x256xf32>
    %11 = arith.addf %6, %10 : vector<8x256xf32>
    %c254_i32 = arith.constant 254 : i32
    %12 = tpu.dynamic_rotate %1 by %c254_i32 dim 1 : vector<4x256xf32>, i32 -> vector<4x256xf32>
    %c2 = arith.constant 2 : index
    %c0_9 = arith.constant 0 : index
    %c0_10 = arith.constant 0 : index
    %13 = vector.load %arg2[%c2, %c0_9, %c0_10] : memref<9x8x4xf32, #tpu.memory_space<vmem>>, vector<1x8x4xf32>
    %14 = vector.shape_cast %13 : vector<1x8x4xf32> to vector<8x4xf32>
    %cst_11 = arith.constant dense<0.000000e+00> : vector<8x256xf32>
    %15 = tpu.matmul %14, %12, %cst_11 {dimension_numbers = #tpu.dot_dimension_numbers<[1], [0], [0], [1], [0, 0, 1, 1], [], []>} : vector<8x4xf32>, vector<4x256xf32>, vector<8x256xf32> -> vector<8x256xf32>
    %16 = arith.addf %11, %15 : vector<8x256xf32>
    %c240_i32 = arith.constant 240 : i32
    %17 = tpu.dynamic_rotate %1 by %c240_i32 dim 1 : vector<4x256xf32>, i32 -> vector<4x256xf32>
    %c3 = arith.constant 3 : index
    %c0_12 = arith.constant 0 : index
    %c0_13 = arith.constant 0 : index
    %18 = vector.load %arg2[%c3, %c0_12, %c0_13] : memref<9x8x4xf32, #tpu.memory_space<vmem>>, vector<1x8x4xf32>
    %19 = vector.shape_cast %18 : vector<1x8x4xf32> to vector<8x4xf32>
    %cst_14 = arith.constant dense<0.000000e+00> : vector<8x256xf32>
    %20 = tpu.matmul %19, %17, %cst_14 {dimension_numbers = #tpu.dot_dimension_numbers<[1], [0], [0], [1], [0, 0, 1, 1], [], []>} : vector<8x4xf32>, vector<4x256xf32>, vector<8x256xf32> -> vector<8x256xf32>
    %21 = arith.addf %16, %20 : vector<8x256xf32>
    %c239_i32 = arith.constant 239 : i32
    %22 = tpu.dynamic_rotate %1 by %c239_i32 dim 1 : vector<4x256xf32>, i32 -> vector<4x256xf32>
    %c4 = arith.constant 4 : index
    %c0_15 = arith.constant 0 : index
    %c0_16 = arith.constant 0 : index
    %23 = vector.load %arg2[%c4, %c0_15, %c0_16] : memref<9x8x4xf32, #tpu.memory_space<vmem>>, vector<1x8x4xf32>
    %24 = vector.shape_cast %23 : vector<1x8x4xf32> to vector<8x4xf32>
    %cst_17 = arith.constant dense<0.000000e+00> : vector<8x256xf32>
    %25 = tpu.matmul %24, %22, %cst_17 {dimension_numbers = #tpu.dot_dimension_numbers<[1], [0], [0], [1], [0, 0, 1, 1], [], []>} : vector<8x4xf32>, vector<4x256xf32>, vector<8x256xf32> -> vector<8x256xf32>
    %26 = arith.addf %21, %25 : vector<8x256xf32>
    %c238_i32 = arith.constant 238 : i32
    %27 = tpu.dynamic_rotate %1 by %c238_i32 dim 1 : vector<4x256xf32>, i32 -> vector<4x256xf32>
    %c5 = arith.constant 5 : index
    %c0_18 = arith.constant 0 : index
    %c0_19 = arith.constant 0 : index
    %28 = vector.load %arg2[%c5, %c0_18, %c0_19] : memref<9x8x4xf32, #tpu.memory_space<vmem>>, vector<1x8x4xf32>
    %29 = vector.shape_cast %28 : vector<1x8x4xf32> to vector<8x4xf32>
    %cst_20 = arith.constant dense<0.000000e+00> : vector<8x256xf32>
    %30 = tpu.matmul %29, %27, %cst_20 {dimension_numbers = #tpu.dot_dimension_numbers<[1], [0], [0], [1], [0, 0, 1, 1], [], []>} : vector<8x4xf32>, vector<4x256xf32>, vector<8x256xf32> -> vector<8x256xf32>
    %31 = arith.addf %26, %30 : vector<8x256xf32>
    %c224_i32 = arith.constant 224 : i32
    %32 = tpu.dynamic_rotate %1 by %c224_i32 dim 1 : vector<4x256xf32>, i32 -> vector<4x256xf32>
    %c6 = arith.constant 6 : index
    %c0_21 = arith.constant 0 : index
    %c0_22 = arith.constant 0 : index
    %33 = vector.load %arg2[%c6, %c0_21, %c0_22] : memref<9x8x4xf32, #tpu.memory_space<vmem>>, vector<1x8x4xf32>
    %34 = vector.shape_cast %33 : vector<1x8x4xf32> to vector<8x4xf32>
    %cst_23 = arith.constant dense<0.000000e+00> : vector<8x256xf32>
    %35 = tpu.matmul %34, %32, %cst_23 {dimension_numbers = #tpu.dot_dimension_numbers<[1], [0], [0], [1], [0, 0, 1, 1], [], []>} : vector<8x4xf32>, vector<4x256xf32>, vector<8x256xf32> -> vector<8x256xf32>
    %36 = arith.addf %31, %35 : vector<8x256xf32>
    %c223_i32 = arith.constant 223 : i32
    %37 = tpu.dynamic_rotate %1 by %c223_i32 dim 1 : vector<4x256xf32>, i32 -> vector<4x256xf32>
    %c7 = arith.constant 7 : index
    %c0_24 = arith.constant 0 : index
    %c0_25 = arith.constant 0 : index
    %38 = vector.load %arg2[%c7, %c0_24, %c0_25] : memref<9x8x4xf32, #tpu.memory_space<vmem>>, vector<1x8x4xf32>
    %39 = vector.shape_cast %38 : vector<1x8x4xf32> to vector<8x4xf32>
    %cst_26 = arith.constant dense<0.000000e+00> : vector<8x256xf32>
    %40 = tpu.matmul %39, %37, %cst_26 {dimension_numbers = #tpu.dot_dimension_numbers<[1], [0], [0], [1], [0, 0, 1, 1], [], []>} : vector<8x4xf32>, vector<4x256xf32>, vector<8x256xf32> -> vector<8x256xf32>
    %41 = arith.addf %36, %40 : vector<8x256xf32>
    %c222_i32 = arith.constant 222 : i32
    %42 = tpu.dynamic_rotate %1 by %c222_i32 dim 1 : vector<4x256xf32>, i32 -> vector<4x256xf32>
    %c8 = arith.constant 8 : index
    %c0_27 = arith.constant 0 : index
    %c0_28 = arith.constant 0 : index
    %43 = vector.load %arg2[%c8, %c0_27, %c0_28] : memref<9x8x4xf32, #tpu.memory_space<vmem>>, vector<1x8x4xf32>
    %44 = vector.shape_cast %43 : vector<1x8x4xf32> to vector<8x4xf32>
    %cst_29 = arith.constant dense<0.000000e+00> : vector<8x256xf32>
    %45 = tpu.matmul %44, %42, %cst_29 {dimension_numbers = #tpu.dot_dimension_numbers<[1], [0], [0], [1], [0, 0, 1, 1], [], []>} : vector<8x4xf32>, vector<4x256xf32>, vector<8x256xf32> -> vector<8x256xf32>
    %46 = arith.addf %41, %45 : vector<8x256xf32>
    %c0_30 = arith.constant 0 : index
    %c0_31 = arith.constant 0 : index
    %47 = vector.load %arg3[%c0_30, %c0_31] : memref<8x1xf32, #tpu.memory_space<vmem>>, vector<8x1xf32>
    %48 = vector.broadcast %47 : vector<8x1xf32> to vector<8x256xf32>
    %49 = arith.addf %46, %48 : vector<8x256xf32>
    %c0_32 = arith.constant 0 : index
    %c0_33 = arith.constant 0 : index
    %c0_34 = arith.constant 0 : index
    %50 = vector.load %arg4[%c0_32, %c0_33, %c0_34] : memref<1x8x256xf32, #tpu.memory_space<vmem>>, vector<1x8x256xf32>
    %51 = vector.shape_cast %50 : vector<1x8x256xf32> to vector<8x256xf32>
    %52 = vector.shape_cast %49 : vector<8x256xf32> to vector<1x8x256xf32>
    tpu.vector_store %arg4[%c0_32, %c0_33, %c0_34], %52 {strides = array<i32>} : memref<1x8x256xf32, #tpu.memory_space<vmem>>, vector<1x8x256xf32>,
    return
  }
  func.func @transform_0(%arg0: i32) -> (i32, i32, i32) {
    %c0_i32 = arith.constant 0 : i32
    %c0_i32_0 = arith.constant 0 : i32
    %c0_i32_1 = arith.constant 0 : i32
    return %arg0, %c0_i32, %c0_i32_0 : i32, i32, i32
  }
  func.func @transform_1(%arg0: i32) -> (i32, i32, i32) {
    %c0_i32 = arith.constant 0 : i32
    %c0_i32_0 = arith.constant 0 : i32
    %c0_i32_1 = arith.constant 0 : i32
    %c0_i32_2 = arith.constant 0 : i32
    return %c0_i32, %c0_i32_0, %c0_i32_1 : i32, i32, i32
  }
  func.func @transform_2(%arg0: i32) -> (i32, i32) {
    %c0_i32 = arith.constant 0 : i32
    %c0_i32_0 = arith.constant 0 : i32
    %c0_i32_1 = arith.constant 0 : i32
    return %c0_i32, %c0_i32_0 : i32, i32
  }
  func.func @transform_3(%arg0: i32) -> (i32, i32, i32) {
    %c0_i32 = arith.constant 0 : i32
    %c0_i32_0 = arith.constant 0 : i32
    %c0_i32_1 = arith.constant 0 : i32
    return %arg0, %c0_i32, %c0_i32_0 : i32, i32, i32
  }
}

</mosaic_0001>

<bundles_post_ra>
// kernel: tpu_custom_call.1
= control target key start
LH: loop header
LB: loop body
LE: loop exit
PB: predicated region body
PF: predicated region fallthrough
CT: control target
= control target key end

     0   :  { %8 = vsyncpa [#allocation3], 0  ;;  %s1453_s0 = inlined_call_operand.vmem [shape: f32[2,4,256], index: 0, kind: input, shape index: {}]   ;;  %s1454_s1 = inlined_call_operand.vmem [shape: f32[9,8,4], index: 1, kind: input, shape index: {}]   ;;  %s1455_s2 = inlined_call_operand.vmem [shape: f32[8,1], index: 2, kind: input, shape index: {}]   ;;  %s1456_s3 = inlined_call_operand.hbm [shape: f32[2,8,256], index: 3, kind: output, shape index: {}]  }
   0x1   :  { %10 = vsyncpa [#allocation3 + $0x1], 0  ;;  %s1277_s12 = smov 0   ;;  %s1279_s13 = smov 0  }
   0x2   :  { %s1281_s14 = smov 0   ;;  %s1283_s15 = smov 0  }
   0x3 LB: > { %s1298_s16 = sadd.s32 4294967295, %s1244_s15   ;;  %s1066_s17 = sadd.s32 4294967294, %s1244_s15   ;;  %s1244_s15 = sphi %s1283_s15, %s1462_s15   ;;  %s1240_s14 = sphi %s1281_s14, %s1461_s14   ;;  %s1236_s13 = sphi %s1279_s13, %s1460_s13   ;;  %s1232_s12 = sphi %s1277_s12, %s1459_s12  }
   0x4   : > { %s1302_s18 = sadd.s32 1, %s1244_s15   ;;  %s91_s19 = sadd.s32 1, %s1240_s14 }
   0x5   : > { %s88_s20 = ssub.s32 %s1244_s15, %s1302_s18  ;;  %p101_p0 = scmp.ne.s32.totalorder %s1240_s14, %s1236_s13 }
   0x6   : > { %p89_p1 = scmp.eq.s32.totalorder %s88_s20, 0  ;;  %p102_p2 = scmp.eq.s32.totalorder %s1298_s16, 1 }
   0x7   : > { %p107_p3 = scmp.ne.s32.totalorder %s1236_s13, %s1232_s12  ;;  %p108_p4 = scmp.eq.s32.totalorder %s1066_s17, 1 }
   0x8   : > { %s1313_s21 = scalar_select %p89_p1, %s1240_s14, %s91_s19  }
   0x9   : > { %p1315_p5 = por %p102_p2, %p101_p0  ;;  %p1319_p6 = por %p108_p4, %p107_p3 }
   0xa   : > { %p1069_p7 = scmp.ge.s32.totalorder %s1244_s15, 1  ;;  %p140_p8 = scmp.lt.s32.totalorder %s1244_s15, 3 }
   0xc   : > { %p141_p9 = pnand %p1069_p7, %p140_p8 }
   0xd   : > { %p164_p10 = scmp.lt.s32.totalorder (!%p141_p9), %s1298_s16, 1  ;;  %v1246_v0 = vmov (!%p141_p9), 0.0   ;;  %s1247_s29 = smov (!%p141_p9), 127   ;;  %v1254_v3 = vmov (!%p141_p9), 0   ;;  %v982_v4 = vld [vmem:[%s1455_s2] sm:$0xff] (!%p141_p9)  ;;  %v178_v5 = vlaneseq (!%p141_p9)  ;;  %vm189_vm2 = vcmask (!%p141_p9), 1043456  }
   0xe   : > { %144 = sbr.rel (%p141_p9) target bundleno = 411 (0x19b), region = 32  ;;  %260 = vmatprep.mubr.f32.mxu1 (!%p141_p9), %v1246_v0  ;;  %609 = vmatprep.mubr.f32.mxu0 (!%p141_p9), %v1246_v0  ;;  %s1248_s30 = smov (!%p141_p9), 111   ;;  %vm185_vm3 = vcmask (!%p141_p9), 31744   ;;  %v1073_v15 = vld [vmem:[%s1454_s1 + $0x8] sm:$0xff] (!%p141_p9)  ;;  %v1088_v16 = vld [vmem:[%s1454_s1 + $0x20] sm:$0xff] (!%p141_p9)  ;;  %v1080_v34 = vld [vmem:[%s1454_s1 + $0x10] sm:$0xff] (!%p141_p9) }
   0xf   : > { %s1249_s4 = smov (!%p141_p9), 110   ;;  %s1250_s5 = smov (!%p141_p9), 96   ;;  %1180 = vset.pattern.permute.xlu0 (!%p141_p9), %v1254_v3  ;;  %v1335_v6 = vand.u32 (!%p141_p9), 127, %v178_v5  ;;  %v170_v24 = vld [vmem:[%s1454_s1] sm:$0xff] (!%p141_p9)  ;;  %v1092_v25 = vld [vmem:[%s1454_s1 + $0x28] sm:$0xff] (!%p141_p9)  ;;  %v1096_v35 = vld [vmem:[%s1454_s1 + $0x30] sm:$0xff] (!%p141_p9) }
  0x10   : > { %s1251_s6 = smov (!%p141_p9), 126   ;;  %s1252_s7 = smov (!%p141_p9), 95   ;;  %v1084_v44 = vld [vmem:[%s1454_s1 + $0x18] sm:$0xff] (!%p141_p9)  ;;  %v1104_v47 = vld [vmem:[%s1454_s1 + $0x40] sm:$0xff] (!%p141_p9) }
  0x11   : > { %s1253_s8 = smov (!%p141_p9), 112   ;;  %s1255_s9 = smov (!%p141_p9), 94   ;;  %vm180_vm0 = vcmp.lt.s32.totalorder (!%p141_p9), %v1335_v6, 127  ;;  %vm531_vm1 = vcmp.lt.s32.totalorder (!%p141_p9), %v1335_v6, 111  ;;  %vm622_vm4 = vcmp.lt.s32.totalorder (!%p141_p9), %v1335_v6, 110  ;;  %vm713_vm5 = vcmp.lt.s32.totalorder (!%p141_p9), %v1335_v6, 96 }
  0x12   : > { %vm349_vm6 = vcmp.lt.s32.totalorder (!%p141_p9), %v1335_v6, 126  ;;  %vm804_vm7 = vcmp.lt.s32.totalorder (!%p141_p9), %v1335_v6, 95  ;;  %vm440_vm8 = vcmp.lt.s32.totalorder (!%p141_p9), %v1335_v6, 112  ;;  %vm895_vm9 = vcmp.lt.s32.totalorder (!%p141_p9), %v1335_v6, 94  ;;  %v1100_v45 = vld [vmem:[%s1454_s1 + $0x38] sm:$0xff] (!%p141_p9)  ;;  %s161_s17 = sand.u32 (!%p141_p9), 1, %s1236_s13  }
  0x13   : > { %s1070_s19 = sshll.u32 (!%p141_p9), %s161_s17, 4  ;;  %s1114_s20 = sshll.u32 (!%p141_p9), %s1298_s16, 8 }
  0x15   : > { %s165_s24 = scalar_select %p164_p10, %s1298_s16, 1 }
  0x16   : > { %s1256_s16 = smov [#allocation2]  }
  0x17   : > { %s1113_s25 = sshll.u32 %s165_s24, 3  ;;  %s163_s24 = scalar_lea.vmem [#allocation2], %s1070_s19 }
  0x18   : > { %s168_s28 = scalar_lea.vmem %s1453_s0, %s1113_s25  ;;  %s1007_s25 = sshll.u32 %s163_s24, 4  ;;  %s1413_s25 = int_to_ptr.vmem [resolvable:$true] %s1007_s25 }
  0x19   : > { %v169_v1 = vld [vmem:[%s168_s28] sm:$0xff]  ;;  %s1411_s28 = scalar_lea.hbm %s1456_s3, %s1114_s20 }
  0x1a   : > { %174 = vrot.lane.b32.xlu1 %v169_v1, %s1247_s29  ;;  %527 = vrot.lane.b32.xlu0 %v169_v1, %s1248_s30  ;;  %v172_v2 = vcombine.high %v169_v1, %v169_v1 }
  0x1e   : > { %176 = vrot.lane.b32.xlu1 %v172_v2, %s1247_s29  ;;  %529 = vrot.lane.b32.xlu0 %v172_v2, %s1248_s30  ;;  %s993_s29 = scalar_lea.sflag [#allocation3], %s161_s17  ;;  %s1182_s30 = scalar_lea.vmem %s1413_s25, 256 }
  0x1f   : > { %p1183_p11 = scmp.ne.s32.totalorder %s1413_s25, %s1182_s30 }
  0x21   : > { %p1184_p12 = pnand %p1183_p11, %p1315_p5 }
  0x22   : > { %620 = vrot.lane.b32.xlu1 %v172_v2, %s1249_s4  ;;  %618 = vrot.lane.b32.xlu0 %v169_v1, %s1249_s4  ;;  %s1186_s4 = sshll.u32 %s1256_s16, 4  ;;  %s1187_s4 = int_to_ptr.vmem [resolvable:$false] %s1186_s4 }
  0x23   : > { %p1185_p13 = pneg %p1184_p12  ;;  %p1189_p0 = scmp.lt.s32.totalorder %s1413_s25, %s1187_s4 }
  0x26   : > { %711 = vrot.lane.b32.xlu1 %v172_v2, %s1250_s5  ;;  %709 = vrot.lane.b32.xlu0 %v169_v1, %s1250_s5  ;;  %s1188_s5 = scalar_lea.vmem %s1187_s4, 512 }
  0x27   : > { %p1190_p1 = scmp.lt.s32.totalorder %s1188_s5, %s1182_s30 }
  0x29   : > { %p1191_p2 = por %p1190_p1, %p1189_p0 }
  0x2a   : > { %347 = vrot.lane.b32.xlu1 %v172_v2, %s1251_s6  ;;  %345 = vrot.lane.b32.xlu0 %v169_v1, %s1251_s6 }
  0x2b   : > { %p1192_p3 = pnand %p1191_p2, %p1185_p13 }
  0x2e   : > { %802 = vrot.lane.b32.xlu1 %v172_v2, %s1252_s7  ;;  %800 = vrot.lane.b32.xlu0 %v169_v1, %s1252_s7 }
  0x32   : > { %438 = vrot.lane.b32.xlu1 %v172_v2, %s1253_s8  ;;  %436 = vrot.lane.b32.xlu0 %v169_v1, %s1253_s8 }
  0x36   : > { %893 = vrot.lane.b32.xlu1 %v172_v2, %s1255_s9  ;;  %891 = vrot.lane.b32.xlu0 %v169_v1, %s1255_s9 }
  0x3a   : > { %985 = vperm.xlu0 %1180, %v982_v4  }
  0x8c   : > { %v175_v7 = vpop.permute.xlu1 %174  ;;  %v528_v8 = vpop.permute.xlu0 %527 }
  0x90   : > { %v177_v9 = vpop.permute.xlu1 %176  ;;  %v530_v10 = vpop.permute.xlu0 %529 }
  0x91   : > { %v182_v11 = vsel %vm180_vm0, %v177_v9, %v175_v7  ;;  %v533_v12 = vsel %vm531_vm1, %v530_v10, %v528_v8  ;;  %v181_v13 = vsel %vm180_vm0, %v175_v7, %v177_v9  ;;  %v532_v14 = vsel %vm531_vm1, %v528_v8, %v530_v10 }
  0x92   : > { %1074 = vmatprep.subr.msk.mxu1 %vm189_vm2, %v182_v11  ;;  %1089 = vmatprep.subr.msk.mxu0 %vm189_vm2, %v533_v12 }
  0x93   : > { %1075 = vmatpush1.msk.msra.mxu1 %vm189_vm2, %v181_v13  ;;  %1090 = vmatpush1.msk.msra.mxu0 %vm189_vm2, %v532_v14 }
  0x94   : > { %1076 = vmatmul.mubr.msk.f32.vlgmr.msra.gmra.mrb[0].mxu1 %vm185_vm3, %v1073_v15  ;;  %v621_v17 = vpop.permute.xlu1 %620  ;;  %1091 = vmatmul.mubr.msk.f32.vlgmr.msra.gmra.mrb[0].mxu0 %vm185_vm3, %v1088_v16  ;;  %v619_v18 = vpop.permute.xlu0 %618 }
  0x95   : > { %v623_v19 = vsel %vm622_vm4, %v619_v18, %v621_v17  ;;  %v624_v20 = vsel %vm622_vm4, %v621_v17, %v619_v18  ;;  %1077 = vmatprep.subr.msk.mxu1 %vm189_vm2, %v172_v2  ;;  %338 = vmatprep.mubr.f32.mxu1 %v1246_v0 }
  0x96   : > { %1093 = vmatprep.subr.msk.mxu0 %vm189_vm2, %v624_v20  ;;  %1078 = vmatpush1.msk.msra.mxu1 %vm189_vm2, %v169_v1 }
  0x97   : > { %1094 = vmatpush1.msk.msra.mxu0 %vm189_vm2, %v623_v19  ;;  %700 = vmatprep.mubr.f32.mxu0 %v1246_v0 }
  0x98   : > { %v712_v21 = vpop.permute.xlu1 %711  ;;  %v710_v22 = vpop.permute.xlu0 %709 }
  0x99   : > { %v715_v23 = vsel %vm713_vm5, %v712_v21, %v710_v22  ;;  %v714_v26 = vsel %vm713_vm5, %v710_v22, %v712_v21 }
  0x9a   : > { %1097 = vmatprep.subr.msk.mxu0 %vm189_vm2, %v715_v23 }
  0x9c   : > { %1079 = vmatmul.mubr.msk.f32.vlgmr.msra.gmra.mrb[0].mxu1 %vm185_vm3, %v170_v24  ;;  %1095 = vmatmul.mubr.msk.f32.vlgmr.msra.gmra.mrb[0].mxu0 %vm185_vm3, %v1092_v25  ;;  %v348_v27 = vpop.permute.xlu1 %347  ;;  %v346_v28 = vpop.permute.xlu0 %345 }
  0x9d   : > { %1098 = vmatpush1.msk.msra.mxu0 %vm189_vm2, %v714_v26  ;;  %v350_v29 = vsel %vm349_vm6, %v346_v28, %v348_v27  ;;  %v351_v30 = vsel %vm349_vm6, %v348_v27, %v346_v28  ;;  %427 = vmatprep.mubr.f32.mxu1 %v1246_v0 }
  0x9e   : > { %1081 = vmatprep.subr.msk.mxu1 %vm189_vm2, %v351_v30  ;;  %791 = vmatprep.mubr.f32.mxu0 %v1246_v0 }
  0x9f   : > { %1082 = vmatpush1.msk.msra.mxu1 %vm189_vm2, %v350_v29 }
  0xa0   : > { %v803_v31 = vpop.permute.xlu1 %802  ;;  %v801_v32 = vpop.permute.xlu0 %800 }
  0xa1   : > { %v806_v33 = vsel %vm804_vm7, %v803_v31, %v801_v32  ;;  %v805_v36 = vsel %vm804_vm7, %v801_v32, %v803_v31 }
  0xa2   : > { %1101 = vmatprep.subr.msk.mxu0 %vm189_vm2, %v806_v33 }
  0xa4   : > { %1083 = vmatmul.mubr.msk.f32.vlgmr.msra.gmra.mrb[0].mxu1 %vm185_vm3, %v1080_v34  ;;  %1099 = vmatmul.mubr.msk.f32.vlgmr.msra.gmra.mrb[0].mxu0 %vm185_vm3, %v1096_v35  ;;  %v439_v37 = vpop.permute.xlu1 %438  ;;  %v437_v38 = vpop.permute.xlu0 %436 }
  0xa5   : > { %1102 = vmatpush1.msk.msra.mxu0 %vm189_vm2, %v805_v36  ;;  %v441_v39 = vsel %vm440_vm8, %v437_v38, %v439_v37  ;;  %v442_v40 = vsel %vm440_vm8, %v439_v37, %v437_v38  ;;  %518 = vmatprep.mubr.f32.mxu1 %v1246_v0 }
  0xa6   : > { %1085 = vmatprep.subr.msk.mxu1 %vm189_vm2, %v442_v40  ;;  %882 = vmatprep.mubr.f32.mxu0 %v1246_v0 }
  0xa7   : > { %1086 = vmatpush1.msk.msra.mxu1 %vm189_vm2, %v441_v39 }
  0xa8   : > { %v894_v41 = vpop.permute.xlu1 %893  ;;  %v892_v42 = vpop.permute.xlu0 %891 }
  0xa9   : > { %v897_v43 = vsel %vm895_vm9, %v894_v41, %v892_v42  ;;  %v896_v46 = vsel %vm895_vm9, %v892_v42, %v894_v41 }
  0xaa   : > { %1105 = vmatprep.subr.msk.mxu0 %vm189_vm2, %v897_v43 }
  0xac   : > { %1087 = vmatmul.mubr.msk.f32.vlgmr.msra.gmra.mrb[0].mxu1 %vm185_vm3, %v1084_v44  ;;  %1103 = vmatmul.mubr.msk.f32.vlgmr.msra.gmra.mrb[0].mxu0 %vm185_vm3, %v1100_v45 }
  0xad   : > { %1106 = vmatpush1.msk.msra.mxu0 %vm189_vm2, %v896_v46  ;;  %973 = vmatprep.mubr.f32.mxu0 %v1246_v0 }
  0xb4   : > { %1107 = vmatmul.mubr.msk.f32.vlgmr.msra.gmra.mrb[0].mxu0 %vm185_vm3, %v1104_v47 }
  0xb9   : > { %v986_v51 = vpop.permute.xlu0 %985 }
 0x17f   : > { %v520_v48 = vpop.f32.mrb[0].mxu1 }
 0x180   : > { %v522_v49 = vpop.f32.mrb[1].mxu1 }
 0x187   : > { %v975_v50 = vpop.f32.mrb[0].mxu0 }
 0x188   : > { %v1115_v52 = vadd.f32 %v975_v50, %v520_v48  ;;  %v977_v53 = vpop.f32.mrb[1].mxu0 }
 0x189   : > { %v1116_v54 = vadd.f32 %v977_v53, %v522_v49 }
 0x18a   : > { %v988_v55 = vadd.f32 %v1115_v52, %v986_v51 }
 0x18b   : > { %v989_v56 = vadd.f32 %v1116_v54, %v986_v51 }
 0x18c   : > { %990 = vst [vmem:[%s163_s24] sm:$0xff] %v988_v55 }
 0x18d   : > { %991 = vst [vmem:[%s163_s24 + $0x8] sm:$0xff] %v989_v56 }
 0x18e   : > { %1195 = shalt.err (!%p1192_p3)
}
 0x18f   : > { %s1196_s6 = scalar_lea.hbm %s1411_s28, 256  ;;  %s1200_s9 = scalar_lea.hbm %s1456_s3, 512 }
 0x190   : > { %p1197_p4 = scmp.ne.s32.totalorder %s1411_s28, %s1196_s6  ;;  %p1201_p9 = scmp.lt.u32.totalorder %s1411_s28, %s1456_s3 }
 0x191   : > { %p1202_p10 = scmp.lt.u32.totalorder %s1200_s9, %s1196_s6  ;;  %p1204_p12 = scmp.lt.u32.totalorder %s1196_s6, %s1411_s28 }
 0x192   : > { %p1198_p7 = pnand %p1197_p4, %p1315_p5 }
 0x193   : > { %p1203_p11 = por %p1202_p10, %p1201_p9 }
 0x194   : > { %p1199_p8 = pneg %p1198_p7 }
 0x195   : > { %p1205_p13 = por %p1204_p12, %p1203_p11 }
 0x197   : > { %p1206_p0 = pnand %p1205_p13, %p1199_p8 }
 0x199   : > { %1209 = shalt.err (!%p1206_p0)
}
 0x19a   : > { %1131 = dma.vmem_to_hbm [thread:$0]  (%p1315_p5), %s1413_s25, 256, %s1411_s28, %s993_s29  }
 0x19b PF: > { %p1137_p1 = scmp.ge.s32.totalorder %s1244_s15, 2  ;;  %s1019_s17 = sand.u32 1, %s1232_s12  }
 0x19c   : > { %s1020_s19 = scalar_lea.sflag [#allocation3], %s1019_s17 }
 0x19d   : > { %p1134_p2 = pnand %p1137_p1, %p1319_p6 }
 0x19f   : > { %1227 = dma.done.wait (!%p1134_p2), %s1020_s19, 256  }
 0x1a0   : > { %1229 = vsyncadd (!%p1134_p2), %s1020_s19, 4294967040  ;;  %p13_p3 = scmp.ge.s32.totalorder %s1302_s18, 4   ;;  %s1459_s12 = smov %s1236_s13 }
 0x1a1   : > { %s1460_s13 = smov %s1240_s14  ;;  %s1461_s14 = smov %s1313_s21 }
 0x1a2   : > { %s1462_s15 = smov %s1302_s18  ;;  %15 = sbr.rel (!%p13_p3) target bundleno = 3 (0x3), region = 75 }
 0x1a9   :  { %1025 = vsyncpa [#allocation3], 1 }
 0x1aa   :  { %1027 = vsyncpa [#allocation3 + $0x1], 1 }

</bundles_post_ra>
